<compile_context>
chip_gen: v5e
topology: v5e:2x2
jax: 0.10.0
libtpu: 0.0.40
codegen_flags: <defaults>
</compile_context>

<pallas_src>
import functools

import jax
import jax.numpy as jnp
from jax.experimental import pallas as pl
from jax.experimental.pallas import tpu as pltpu

IN_FEATURES = 18       # old_state_and_action_space_size
OUT_FEATURES = 12      # new_state_space_size
HIDDEN = 32

LANE = 128             # TPU lane width
IN_PAD = 32            # x lane-padded 18 -> 32 inside the kernel

# Weight-slab row layout (bf16, shape (288, 128)); offsets are multiples of 16
# so static slices stay aligned to the bf16 (16, 128) tiling.
W1_OFF, W1_ROWS = 0, 32         # real W1 (18, 32) at [0:18,    0:32]
W2_OFF, W2_ROWS = 32, 128       # real W2 (32, 32) at [32:64,   0:32]
W3_OFF, W3_ROWS = 160, 128      # real W3 (32, 12) at [160:192, 0:12]
W_SLAB_ROWS = W3_OFF + W3_ROWS  # 288
B_SLAB_ROWS = 8                 # rows 0/1/2 = b1/b2/b3 (lane-padded, f32)

TB_DEFAULT = 4096      # fits default scoped-VMEM limits on v5e/v6e/v7x


def _mlp_kernel(x_ref, w_ref, b_ref, o_ref, xpad_ref, *, bf16_epilogue):
    # ---- fused f32->bf16 cast + lane pad (18 -> 32) ----------------------
    # Masked stores into a resident VMEM staging buffer.  The pad lanes are
    # rewritten to 0 every grid step (no reliance on program_id == 0 init),
    # which keeps this correct when the batch axis is sharded across
    # TensorCores on v7x.
    xpad_ref[:, :IN_FEATURES] = x_ref[...].astype(jnp.bfloat16)
    xpad_ref[:, IN_FEATURES:] = jnp.zeros(
        (xpad_ref.shape[0], IN_PAD - IN_FEATURES), jnp.bfloat16)
    x = xpad_ref[...]                                   # (TB, 32) bf16

    w1 = w_ref[W1_OFF:W1_OFF + W1_ROWS, :]              # (32, 128)  bf16
    w2 = w_ref[W2_OFF:W2_OFF + W2_ROWS, :]              # (128, 128) bf16
    w3 = w_ref[W3_OFF:W3_OFF + W3_ROWS, :]              # (128, 128) bf16
    b = b_ref[...]                                       # (8, 128)   f32
    b1, b2, b3 = b[0:1, :], b[1:2, :], b[2:3, :]

    def hidden(acc_f32, bias_f32):
        # Bias-add + tanh epilogue.  bf16 on bf16-native VPU/EUP (v6e/v7x),
        # f32 on v5x; either way the next MXU matmul consumes bf16.
        if bf16_epilogue:
            return jnp.tanh(acc_f32.astype(jnp.bfloat16)
                            + bias_f32.astype(jnp.bfloat16))
        return jnp.tanh(acc_f32 + bias_f32).astype(jnp.bfloat16)

    # fc1 / fc2: MXU bf16 matmuls with f32 accumulation.
    h1 = hidden(jnp.dot(x, w1, preferred_element_type=jnp.float32), b1)
    h2 = hidden(jnp.dot(h1, w2, preferred_element_type=jnp.float32), b2)
    # fc3 (no activation), f32 output.
    y = jnp.dot(h2, w3, preferred_element_type=jnp.float32) + b3
    o_ref[...] = y[:, :OUT_FEATURES].astype(o_ref.dtype)


def pack_params(params):
    """Pack w1,b1,w2,b2,w3,b3 into (bf16 weight slab, f32 bias slab)."""
    w_slab = jnp.zeros((W_SLAB_ROWS, LANE), jnp.float32)
    w_slab = w_slab.at[W1_OFF:W1_OFF + IN_FEATURES, 0:HIDDEN].set(params["w1"])
    w_slab = w_slab.at[W2_OFF:W2_OFF + HIDDEN, 0:HIDDEN].set(params["w2"])
    w_slab = w_slab.at[W3_OFF:W3_OFF + HIDDEN, 0:OUT_FEATURES].set(params["w3"])

    b_slab = jnp.zeros((B_SLAB_ROWS, LANE), jnp.float32)
    b_slab = b_slab.at[0, 0:HIDDEN].set(params["b1"])
    b_slab = b_slab.at[1, 0:HIDDEN].set(params["b2"])
    b_slab = b_slab.at[2, 0:OUT_FEATURES].set(params["b3"])
    return w_slab.astype(jnp.bfloat16), b_slab


def _round_up(n, m):
    return ((n + m - 1) // m) * m


def _choose_tb(B, tb):
    """Clamp the batch tile; ensure >= 2 grid steps for megacore at size."""
    tb = max(8, min(int(tb), _round_up(B, 8)))
    if B > 512:
        # Give the v7x batch-parallel split at least 2 grid steps so both
        # TensorCores get work (no-op cost on single-TC v5e/v6e).
        tb = min(tb, _round_up(pl.cdiv(B, 2), 8))
    return tb


def _default_bf16_epilogue():
    """bf16 bias+tanh epilogue on bf16-native VPU/EUP chips (v6e and newer)."""
    try:
        kind = jax.devices()[0].device_kind.lower()
    except Exception:  # pragma: no cover - non-TPU fallback
        return True
    return ("v5" not in kind) and ("v4" not in kind) and ("v3" not in kind)


@functools.partial(jax.jit, static_argnames=("tb", "bf16_epilogue"))
def _forward(x, w_slab, b_slab, tb, bf16_epilogue):
    B = x.shape[0]
    grid = pl.cdiv(B, tb)
    # Only ask for extra scoped VMEM if a caller raises tb past the default;
    # TB_DEFAULT fits every generation's default scoped limit.
    vmem_limit = 48 * 1024 * 1024 if tb > 4096 else None
    kernel = functools.partial(_mlp_kernel, bf16_epilogue=bf16_epilogue)
    return pl.pallas_call(
        kernel,
        out_shape=jax.ShapeDtypeStruct((B, OUT_FEATURES), jnp.float32),
        grid=(grid,),
        in_specs=[
            # x streamed as raw (tb, 18) f32 tiles (last dim == full array
            # dim satisfies the (8,128) rule); pad/cast happens in-kernel.
            pl.BlockSpec((tb, IN_FEATURES), lambda i: (i, 0)),
            # Weight / bias slabs: constant index maps -> DMA'd once,
            # resident in VMEM across the whole grid.
            pl.BlockSpec((W_SLAB_ROWS, LANE), lambda i: (0, 0)),
            pl.BlockSpec((B_SLAB_ROWS, LANE), lambda i: (0, 0)),
        ],
        # Natural 12-lane output block (masked vst); kernel is MXU/EUP-bound
        # so a lane-dense 128-wide f32 output would only add HBM traffic.
        out_specs=pl.BlockSpec((tb, OUT_FEATURES), lambda i: (i, 0)),
        scratch_shapes=[pltpu.VMEM((tb, IN_PAD), jnp.bfloat16)],
        compiler_params=pltpu.CompilerParams(
            dimension_semantics=("parallel",),
            vmem_limit_bytes=vmem_limit),
    )(x, w_slab, b_slab)


def action_to_state_forward(x, w_slab, b_slab, tb=TB_DEFAULT,
                            bf16_epilogue=None):
    """x: (B, 18) f32 -> (B, 12) f32."""
    if bf16_epilogue is None:
        bf16_epilogue = _default_bf16_epilogue()
    x = jnp.asarray(x, jnp.float32)
    tb = _choose_tb(x.shape[0], tb)
    return _forward(x, w_slab, b_slab, tb, bf16_epilogue)


def init_params(key):
    """PyTorch nn.Linear default init: U(-1/sqrt(fan_in), 1/sqrt(fan_in))."""
    def linear(k, fan_in, fan_out):
        kw, kb = jax.random.split(k)
        bound = 1.0 / jnp.sqrt(float(fan_in))
        w = jax.random.uniform(kw, (fan_in, fan_out), jnp.float32,
                               minval=-bound, maxval=bound)
        b = jax.random.uniform(kb, (fan_out,), jnp.float32,
                               minval=-bound, maxval=bound)
        return w, b

    k1, k2, k3 = jax.random.split(key, 3)
    w1, b1 = linear(k1, IN_FEATURES, HIDDEN)
    w2, b2 = linear(k2, HIDDEN, HIDDEN)
    w3, b3 = linear(k3, HIDDEN, OUT_FEATURES)
    return {"w1": w1, "b1": b1, "w2": w2, "b2": b2, "w3": w3, "b3": b3}


def reference_forward(x, params):
    h1 = jnp.tanh(x @ params["w1"] + params["b1"])
    h2 = jnp.tanh(h1 @ params["w2"] + params["b2"])
    return h2 @ params["w3"] + params["b3"]


if __name__ == "__main__":
    key = jax.random.PRNGKey(0)
    kx, kx2, kp = jax.random.split(key, 3)

    params = init_params(kp)
    w_slab, b_slab = pack_params(params)

    # Small single-tile batch (common inference case).
    B = 8
    x = jax.random.normal(kx, (B, IN_FEATURES), jnp.float32)
    out = jax.block_until_ready(action_to_state_forward(x, w_slab, b_slab))
    ref = reference_forward(x, params)
    assert out.shape == (B, OUT_FEATURES)
    # bf16 MXU inputs -> relaxed tolerance vs. the f32 reference.
    assert jnp.allclose(out, ref, atol=3e-2, rtol=3e-2)

    # Ragged batch with a tiny tile: grid = 3 with a partial last tile,
    # exercising the resident-weights + boundary-masking paths (no host pad).
    B2 = 40
    x2 = jax.random.normal(kx2, (B2, IN_FEATURES), jnp.float32)
    out2 = jax.block_until_ready(
        action_to_state_forward(x2, w_slab, b_slab, tb=16))
    ref2 = reference_forward(x2, params)
    assert out2.shape == (B2, OUT_FEATURES)
    assert jnp.allclose(out2, ref2, atol=3e-2, rtol=3e-2)

    # Also exercise the f32-epilogue (v5x) code path regardless of chip.
    out3 = jax.block_until_ready(
        action_to_state_forward(x, w_slab, b_slab, bf16_epilogue=False))
    assert jnp.allclose(out3, ref, atol=3e-2, rtol=3e-2)

    print("KERNEL_OK")
</pallas_src>

<mosaic_0001>
module attributes {stable_mosaic.version = 11 : i64} {
  func.func @_mlp_kernel(%arg0: i32, %arg1: memref<8x18xf32, #tpu.memory_space<vmem>>, %arg2: memref<288x128xbf16, #tpu.memory_space<vmem>>, %arg3: memref<8x128xf32, #tpu.memory_space<vmem>>, %arg4: memref<8x12xf32, #tpu.memory_space<vmem>>, %arg5: memref<8x32xbf16, #tpu.memory_space<vmem>>) attributes {dimension_semantics = [#tpu.dimension_semantics<parallel>], iteration_bounds = array<i64: 1>, scalar_prefetch = 0 : i64, scratch_operands = 1 : i64, tpu.core_type = #tpu.core_type<tc>, window_params = [{transform_indices = @transform_0, window_bounds = array<i64: 8, 18>}, {pipeline_mode = #tpu.pipeline_mode<synchronous>, transform_indices = @transform_1, window_bounds = array<i64: 288, 128>}, {pipeline_mode = #tpu.pipeline_mode<synchronous>, transform_indices = @transform_2, window_bounds = array<i64: 8, 128>}, {transform_indices = @transform_3, window_bounds = array<i64: 8, 12>}]} {
    %c0 = arith.constant 0 : index
    %c0_0 = arith.constant 0 : index
    %0 = vector.load %arg1[%c0, %c0_0] : memref<8x18xf32, #tpu.memory_space<vmem>>, vector<8x18xf32>
    %1 = arith.truncf %0 : vector<8x18xf32> to vector<8x18xbf16>
    %c0_1 = arith.constant 0 : index
    %c0_2 = arith.constant 0 : index
    %2 = vector.load %arg5[%c0_1, %c0_2] : memref<8x32xbf16, #tpu.memory_space<vmem>>, vector<8x18xbf16>
    tpu.vector_store %arg5[%c0_1, %c0_2], %1 {strides = array<i32>} : memref<8x32xbf16, #tpu.memory_space<vmem>>, vector<8x18xbf16>,
    %cst = arith.constant 0.000000e+00 : bf16
    %3 = vector.broadcast %cst : bf16 to vector<8x14xbf16>
    %c0_3 = arith.constant 0 : index
    %c18 = arith.constant 18 : index
    %4 = vector.load %arg5[%c0_3, %c18] : memref<8x32xbf16, #tpu.memory_space<vmem>>, vector<8x14xbf16>
    tpu.vector_store %arg5[%c0_3, %c18], %3 {strides = array<i32>} : memref<8x32xbf16, #tpu.memory_space<vmem>>, vector<8x14xbf16>,
    %c0_4 = arith.constant 0 : index
    %c0_5 = arith.constant 0 : index
    %5 = vector.load %arg5[%c0_4, %c0_5] : memref<8x32xbf16, #tpu.memory_space<vmem>>, vector<8x32xbf16>
    %c0_6 = arith.constant 0 : index
    %c0_7 = arith.constant 0 : index
    %6 = vector.load %arg2[%c0_6, %c0_7] : memref<288x128xbf16, #tpu.memory_space<vmem>>, vector<32x128xbf16>
    %c32 = arith.constant 32 : index
    %c0_8 = arith.constant 0 : index
    %7 = vector.load %arg2[%c32, %c0_8] : memref<288x128xbf16, #tpu.memory_space<vmem>>, vector<128x128xbf16>
    %c160 = arith.constant 160 : index
    %c0_9 = arith.constant 0 : index
    %8 = vector.load %arg2[%c160, %c0_9] : memref<288x128xbf16, #tpu.memory_space<vmem>>, vector<128x128xbf16>
    %c0_10 = arith.constant 0 : index
    %c0_11 = arith.constant 0 : index
    %9 = vector.load %arg3[%c0_10, %c0_11] : memref<8x128xf32, #tpu.memory_space<vmem>>, vector<8x128xf32>
    %10 = vector.extract_strided_slice %9 {offsets = [0, 0], sizes = [1, 128], strides = [1, 1]} : vector<8x128xf32> to vector<1x128xf32>
    %11 = vector.extract_strided_slice %9 {offsets = [1, 0], sizes = [1, 128], strides = [1, 1]} : vector<8x128xf32> to vector<1x128xf32>
    %12 = vector.extract_strided_slice %9 {offsets = [2, 0], sizes = [1, 128], strides = [1, 1]} : vector<8x128xf32> to vector<1x128xf32>
    %cst_12 = arith.constant dense<0.000000e+00> : vector<8x128xf32>
    %13 = tpu.matmul %5, %6, %cst_12 {dimension_numbers = #tpu.dot_dimension_numbers<[1], [0], [0], [1], [0, 0, 1, 1], [], []>} : vector<8x32xbf16>, vector<32x128xbf16>, vector<8x128xf32> -> vector<8x128xf32>
    %14 = arith.truncf %13 : vector<8x128xf32> to vector<8x128xbf16>
    %15 = arith.truncf %10 : vector<1x128xf32> to vector<1x128xbf16>
    %16 = vector.broadcast %15 : vector<1x128xbf16> to vector<8x128xbf16>
    %17 = arith.addf %14, %16 : vector<8x128xbf16>
    %18 = math.tanh %17 : vector<8x128xbf16>
    %cst_13 = arith.constant dense<0.000000e+00> : vector<8x128xf32>
    %19 = tpu.matmul %18, %7, %cst_13 {dimension_numbers = #tpu.dot_dimension_numbers<[1], [0], [0], [1], [0, 0, 1, 1], [], []>} : vector<8x128xbf16>, vector<128x128xbf16>, vector<8x128xf32> -> vector<8x128xf32>
    %20 = arith.truncf %19 : vector<8x128xf32> to vector<8x128xbf16>
    %21 = arith.truncf %11 : vector<1x128xf32> to vector<1x128xbf16>
    %22 = vector.broadcast %21 : vector<1x128xbf16> to vector<8x128xbf16>
    %23 = arith.addf %20, %22 : vector<8x128xbf16>
    %24 = math.tanh %23 : vector<8x128xbf16>
    %cst_14 = arith.constant dense<0.000000e+00> : vector<8x128xf32>
    %25 = tpu.matmul %24, %8, %cst_14 {dimension_numbers = #tpu.dot_dimension_numbers<[1], [0], [0], [1], [0, 0, 1, 1], [], []>} : vector<8x128xbf16>, vector<128x128xbf16>, vector<8x128xf32> -> vector<8x128xf32>
    %26 = vector.broadcast %12 : vector<1x128xf32> to vector<8x128xf32>
    %27 = arith.addf %25, %26 : vector<8x128xf32>
    %28 = vector.extract_strided_slice %27 {offsets = [0, 0], sizes = [8, 12], strides = [1, 1]} : vector<8x128xf32> to vector<8x12xf32>
    %c0_15 = arith.constant 0 : index
    %c0_16 = arith.constant 0 : index
    %29 = vector.load %arg4[%c0_15, %c0_16] : memref<8x12xf32, #tpu.memory_space<vmem>>, vector<8x12xf32>
    tpu.vector_store %arg4[%c0_15, %c0_16], %28 {strides = array<i32>} : memref<8x12xf32, #tpu.memory_space<vmem>>, vector<8x12xf32>,
    return
  }
  func.func @transform_0(%arg0: i32) -> (i32, i32) {
    %c0_i32 = arith.constant 0 : i32
    %c0_i32_0 = arith.constant 0 : i32
    return %arg0, %c0_i32 : i32, i32
  }
  func.func @transform_1(%arg0: i32) -> (i32, i32) {
    %c0_i32 = arith.constant 0 : i32
    %c0_i32_0 = arith.constant 0 : i32
    %c0_i32_1 = arith.constant 0 : i32
    return %c0_i32, %c0_i32_0 : i32, i32
  }
  func.func @transform_2(%arg0: i32) -> (i32, i32) {
    %c0_i32 = arith.constant 0 : i32
    %c0_i32_0 = arith.constant 0 : i32
    %c0_i32_1 = arith.constant 0 : i32
    return %c0_i32, %c0_i32_0 : i32, i32
  }
  func.func @transform_3(%arg0: i32) -> (i32, i32) {
    %c0_i32 = arith.constant 0 : i32
    %c0_i32_0 = arith.constant 0 : i32
    return %arg0, %c0_i32 : i32, i32
  }
}

</mosaic_0001>

<bundles_post_ra>
// kernel: _forward.1
= control target key start
LH: loop header
LB: loop body
LE: loop exit
PB: predicated region body
PF: predicated region fallthrough
CT: control target
= control target key end

     0   :  { %8 = vsyncpa [#allocation4], 0  ;;  %s543_s0 = inlined_call_operand.hbm [shape: f32[8,18], index: 0, kind: input, shape index: {}]   ;;  %s544_s1 = inlined_call_operand.hbm [shape: bf16[288,128], index: 1, kind: input, shape index: {}]   ;;  %s545_s2 = inlined_call_operand.hbm [shape: f32[8,128], index: 2, kind: input, shape index: {}]   ;;  %s546_s3 = inlined_call_operand.hbm [shape: f32[8,12], index: 3, kind: output, shape index: {}]  }
   0x1   :  { %9 = vsyncpa [#allocation7], 0  ;;  %s26_s14 = sshll.u32 %s544_s1, 4  ;;  %s27_s14 = int_to_ptr.hbm [resolvable:$true] %s26_s14 }
   0x2   :  { %10 = vsyncpa [#allocation5], 0  ;;  %s504_s15 = smov [#allocation6]   ;;  %s16_s19 = sshll.u32 %s543_s0, 4  ;;  %s17_s19 = int_to_ptr.hbm [resolvable:$true] %s16_s19 }
   0x3   :  { %s28_s16 = sshll.u32 %s504_s15, 4  ;;  %s505_s20 = smov 64   ;;  %s29_s16 = int_to_ptr.vmem [resolvable:$true] %s28_s16 }
   0x4   :  { %s506_s21 = smov 4   ;;  %s507_s22 = smov [#allocation3]  }
   0x5   :  { %34 = dma.hbm_to_vmem [thread:$0]  %s27_s14, 2304, %s29_s16, [#allocation7], %s505_s20, %s505_s20, %s506_s21  }
   0x6   :  { %s18_s23 = sshll.u32 %s507_s22, 4  ;;  %s40_s26 = sshll.u32 %s545_s2, 4  ;;  %s19_s23 = int_to_ptr.vmem [resolvable:$true] %s18_s23  ;;  %s41_s26 = int_to_ptr.hbm [resolvable:$true] %s40_s26 }
   0x7   :  { %21 = dma.hbm_to_vmem [thread:$0]  %s17_s19, 128, %s19_s23, [#allocation4]  }
   0x8   :  { %s508_s1 = smov [#allocation8]  }
   0x9   :  { %s42_s27 = sshll.u32 %s508_s1, 4  ;;  %s43_s27 = int_to_ptr.vmem [resolvable:$true] %s42_s27 }
   0xa   :  { %45 = dma.hbm_to_vmem [thread:$0]  %s41_s26, 128, %s43_s27, [#allocation7]  }
   0xb   :  { %498 = dma.done.wait [#allocation4], 128  }
   0xc   :  { %499 = vsyncadd [#allocation4], 4294967168 }
   0xd   :  { %500 = dma.done.wait [#allocation7], 2432  }
   0xe   :  { %501 = vsyncadd [#allocation7], 4294964864  ;;  %v374_v0 = vld [vmem:[#allocation6 + $0x8] sm:$0xff]  ;;  %v59_v1 = vld [vmem:[#allocation3] sm:$0xff]  ;;  %vm61_vm0 = vcmask 142336   ;;  %vm63_vm1 = vcmask 257168  }
   0xf   :  { %v60_v2 = vpack.c.bf16 %v59_v1, %v59_v1  ;;  %v382_v3 = vld [vmem:[#allocation6 + $0x48] sm:$0xff]  ;;  %125 = vmatpush.bf16.msra.mxu0 %v374_v0  ;;  %v373_v4 = vld [vmem:[#allocation6] sm:$0xff]  ;;  %v509_v6 = vmov 0   ;;  %v380_v7 = vld [vmem:[#allocation6 + $0x38] sm:$0xff]  ;;  %vm115_vm2 = vcmask 261120   ;;  %s510_s0 = smov [#allocation9]  }
  0x10   :  { %193 = vmatpush.bf16.msra.mxu1 %v382_v3  ;;  %v381_v5 = vld [vmem:[#allocation6 + $0x40] sm:$0xff]  ;;  %v379_v9 = vld [vmem:[#allocation6 + $0x30] sm:$0xff]  ;;  %v378_v10 = vld [vmem:[#allocation6 + $0x28] sm:$0xff]  ;;  %s287_s2 = sshll.u32 %s510_s0, 4  ;;  %s289_s30 = sshll.u32 %s546_s3, 4  ;;  %vm280_vm3 = vcmask 97280   ;;  %s288_s2 = int_to_ptr.vmem [resolvable:$true] %s287_s2  ;;  %s290_s30 = int_to_ptr.hbm [resolvable:$true] %s289_s30 }
  0x11   :  { %62 = vst.msk [vmem:[#allocation2] sm:$0xf] %vm61_vm0, %v60_v2  ;;  %v377_v11 = vld [vmem:[#allocation6 + $0x20] sm:$0xff]  ;;  %v376_v12 = vld [vmem:[#allocation6 + $0x18] sm:$0xff]  ;;  %v375_v13 = vld [vmem:[#allocation6 + $0x10] sm:$0xff] }
  0x12   :  { %64 = vst.msk [vmem:[#allocation2] sm:$0xf] %vm63_vm1, %v509_v6  ;;  %v102_v14 = vld [vmem:[#allocation8] sm:$0xff]  ;;  %v390_v15 = vld [vmem:[#allocation6 + $0x88] sm:$0xff]  ;;  %v389_v17 = vld [vmem:[#allocation6 + $0x80] sm:$0xff] }
  0x13   :  { %126 = vmatpush.bf16.msra.mxu0 %v373_v4  ;;  %v133_v16 = vpack.c.bf16 %v102_v14, %v102_v14  ;;  %267 = vmatpush.bf16.msra.mxu2 %v390_v15  ;;  %v388_v19 = vld [vmem:[#allocation6 + $0x78] sm:$0xff]  ;;  %v387_v31 = vld [vmem:[#allocation6 + $0x70] sm:$0xff]  ;;  %v386_v32 = vld [vmem:[#allocation6 + $0x68] sm:$0xff]  ;;  %v218_v49 = vperm.slane %v102_v14, 2 }
  0x14   :  { %194 = vmatpush.bf16.msra.mxu1 %v381_v5  ;;  %v385_v33 = vld [vmem:[#allocation6 + $0x60] sm:$0xff]  ;;  %v384_v34 = vld [vmem:[#allocation6 + $0x58] sm:$0xff]  ;;  %v383_v35 = vld [vmem:[#allocation6 + $0x50] sm:$0xff] }
  0x15   :  { %v135_v18 = vpack.i.b16 %v133_v16, %v133_v16  ;;  %v207_v36 = vshrl.u32 %v133_v16, 16 }
  0x17   :  { %268 = vmatpush.bf16.msra.mxu2 %v389_v17  ;;  %v137_v20 = vperm.slane %v135_v18, 0  ;;  %v208_v37 = vpack.i.b16 %v207_v36, %v207_v36 }
  0x18   :  { %195 = vmatpush.bf16.msra.mxu1 %v380_v7 }
  0x19   :  { %v65_v8 = vld [vmem:[#allocation2] sm:$0xf]  ;;  %v139_v23 = vunpack.c.l.bf16 %v137_v20  ;;  %v210_v38 = vperm.slane %v208_v37, 0 }
  0x1a   :  { %308 = vmatmul.msk.bf16.vlgmr.msra.gmra.mxu0 %vm115_vm2, %v65_v8 }
  0x1b   :  { %269 = vmatpush.bf16.msra.mxu2 %v388_v19  ;;  %v212_v41 = vunpack.c.l.bf16 %v210_v38 }
  0x1c   :  { %196 = vmatpush.bf16.msra.mxu1 %v379_v9 }
  0x1f   :  { %270 = vmatpush.bf16.msra.mxu2 %v387_v31 }
  0x20   :  { %197 = vmatpush.bf16.msra.mxu1 %v378_v10 }
  0x23   :  { %271 = vmatpush.bf16.msra.mxu2 %v386_v32 }
  0x24   :  { %198 = vmatpush.bf16.msra.mxu1 %v377_v11 }
  0x27   :  { %272 = vmatpush.bf16.msra.mxu2 %v385_v33 }
  0x28   :  { %199 = vmatpush.bf16.msra.mxu1 %v376_v12 }
  0x2b   :  { %273 = vmatpush.bf16.msra.mxu2 %v384_v34 }
  0x2c   :  { %200 = vmatpush.bf16.msra.mxu1 %v375_v13 }
  0x2f   :  { %274 = vmatpush.bf16.msra.mxu2 %v383_v35 }
  0x97   :  { %v128_v21 = vpop.f32.mrf.mxu0 }
  0x98   :  { %v132_v22 = vpack.c.bf16 %v128_v21, %v128_v21 }
  0x9a   :  { %v138_v24 = vunpack.c.l.bf16 %v132_v22 }
  0x9c   :  { %v140_v25 = vadd.f32 %v139_v23, %v138_v24 }
  0x9e   :  { %v141_v26 = vpack.c.bf16 %v140_v25, %v140_v25 }
  0x9f   :  { %v130_v27 = vpop.f32.mrf.mxu0 }
  0xa0   :  { %v142_v28 = vunpack.c.l.bf16 %v141_v26 }
  0xa2   :  { %398 = vtanh.f32 %v142_v28 }
  0xa8   :  { %v399_v29 = vpop.eup %398 }
  0xa9   :  { %v144_v30 = vpack.c.bf16 %v399_v29, %v399_v29 }
  0xab   :  { %201 = vmatmul.bf16.vlgmr.msra.gmra.mxu1 %v144_v30 }
 0x128   :  { %v202_v39 = vpop.f32.mrf.mxu1 }
 0x129   :  { %v206_v40 = vpack.c.bf16 %v202_v39, %v202_v39 }
 0x12b   :  { %v211_v42 = vunpack.c.l.bf16 %v206_v40 }
 0x12d   :  { %v213_v43 = vadd.f32 %v212_v41, %v211_v42 }
 0x12f   :  { %v214_v44 = vpack.c.bf16 %v213_v43, %v213_v43 }
 0x130   :  { %v204_v45 = vpop.f32.mrf.mxu1 }
 0x131   :  { %v215_v46 = vunpack.c.l.bf16 %v214_v44 }
 0x133   :  { %400 = vtanh.f32 %v215_v46 }
 0x139   :  { %v401_v47 = vpop.eup %400 }
 0x13a   :  { %v217_v48 = vpack.c.bf16 %v401_v47, %v401_v47 }
 0x13c   :  { %275 = vmatmul.bf16.vlgmr.msra.gmra.mxu2 %v217_v48 }
 0x1bf   :  { %v276_v50 = vpop.f32.mrf.mxu2 }
 0x1c0   :  { %v277_v51 = vadd.f32 %v276_v50, %v218_v49 }
 0x1c2   :  { %281 = vst.msk [vmem:[#allocation9] sm:$0xff] %vm280_vm3, %v277_v51 }
 0x1c3   :  { %292 = dma.vmem_to_hbm [thread:$0]  %s288_s2, 128, %s290_s30, [#allocation5]  }
 0x1c7   :  { %v278_v52 = vpop.f32.mrf.mxu2 }
 0x1c8   :  { %502 = dma.done.wait [#allocation5], 128  }
 0x1c9   :  { %503 = vsyncadd [#allocation5], 4294967168 }
 0x1ca   :  { %297 = vsyncpa [#allocation4], 1 }
 0x1cb   :  { %298 = vsyncpa [#allocation7], 1 }
 0x1cc   :  { %299 = vsyncpa [#allocation5], 1 }

</bundles_post_ra>
